<compile_context>
chip_gen: v7x
topology: tpu7x:2x2x1
jax: 0.10.0
libtpu: 0.0.40
codegen_flags: <defaults>
</compile_context>

<pallas_src>
import jax
import jax.numpy as jnp
from jax import lax
from jax.experimental import pallas as pl
from jax.experimental.pallas import tpu as pltpu


def _tree_sum_chunks(x, axis, chunk):
    """Pairwise-add equal `chunk`-sized slices of `x` along `axis`.

    Slices are (8,128)-vreg-tile aligned, so this lowers to pure VPU vreg adds
    (no XLU work, no full-tile VMEM read-modify-write)."""
    n = x.shape[axis] // chunk
    if n <= 1:
        return x
    chunks = [lax.slice_in_dim(x, j * chunk, (j + 1) * chunk, axis=axis)
              for j in range(n)]
    while len(chunks) > 1:
        nxt = [chunks[i] + chunks[i + 1] for i in range(0, len(chunks) - 1, 2)]
        if len(chunks) % 2:
            nxt.append(chunks[-1])
        chunks = nxt
    return chunks[0]


def _align_kernel(s_ref, t_ref, w_ref, b_ref, o_ref, acc_ref):
    """One (batch, chunk, spatial-tile) step of the align path: 1x1-conv the
    student tile on the MXU (native dtype operands, f32 accumulation), then
    fold the squared error into a small (Ct,128) f32 accumulator."""
    hw = pl.program_id(2)

    @pl.when(hw == 0)
    def _init():
        acc_ref[...] = jnp.zeros_like(acc_ref)

    # Native-dtype operands go straight to the MXU; f32 accumulation makes this
    # identical to casting first (bf16 products are exact in f32).
    aligned = jnp.dot(w_ref[...], s_ref[...], preferred_element_type=jnp.float32)
    diff = (aligned + b_ref[...]) - t_ref[...].astype(jnp.float32)   # b pre-cast f32
    sq = diff * diff
    acc_ref[...] += _tree_sum_chunks(sq, axis=1, chunk=128)          # pure VPU

    @pl.when(hw == pl.num_programs(2) - 1)
    def _finalize():
        # Single XLU reduction per (batch, chunk); scalar broadcast into (1,1).
        o_ref[...] = jnp.zeros_like(o_ref) + jnp.sum(acc_ref[...])


def _noalign_kernel(s_ref, t_ref, o_ref, acc_ref):
    """Pure elementwise path on a lane/sublane-dense (tile_r,128) flat view."""
    hw = pl.program_id(2)

    @pl.when(hw == 0)
    def _init():
        acc_ref[...] = jnp.zeros_like(acc_ref)

    diff = s_ref[...].astype(jnp.float32) - t_ref[...].astype(jnp.float32)
    sq = diff * diff
    acc_ref[...] += _tree_sum_chunks(sq, axis=0, chunk=8)            # -> (8,128)

    @pl.when(hw == pl.num_programs(2) - 1)
    def _finalize():
        o_ref[...] = jnp.zeros_like(o_ref) + jnp.sum(acc_ref[...])


def _pick_tile(extent, multiple, cap):
    """Largest multiple of `multiple` that divides `extent` and is <= cap."""
    best = None
    t = multiple
    limit = min(extent, cap)
    while t <= limit:
        if extent % t == 0:
            best = t
        t += multiple
    return best if best is not None else extent


def _vmem_limit_bytes():
    """Per-generation scoped-VMEM limit: ~48 MiB on 128-MiB parts (v5e/v6e),
    ~40 MiB on 64-MiB parts (v7x); conservative fallback if the query fails."""
    try:
        cap = int(getattr(pltpu.get_tpu_info(), "vmem_capacity_bytes", 64 << 20))
    except Exception:  # pragma: no cover - query unavailable
        cap = 64 << 20
    return int(min(48 << 20, cap * 5 // 8))


def l2loss_pallas(preds_S, preds_T, align_w=None, align_b=None, loss_weight=1.0,
                  block_bytes_cap=None):
    """Matches L2Loss.forward:  MSELoss(align(S), T, 'mean') / N * weight.

    preds_S: (N, Cs, H, W), preds_T: (N, Ct, H, W)   [NCHW, native dtype]
    align_w: (Ct, Cs, 1, 1) or None, align_b: (Ct,) or None.
    block_bytes_cap: optional override of the per-input block budget (testing).
    """
    N, Cs, H, W = preds_S.shape
    Nt, Ct, Ht, Wt = preds_T.shape
    assert (H, W) == (Ht, Wt), "the output dim of teacher and student differ"
    assert N == Nt
    HW = H * W

    # NOTE: MSE 'mean' divides by N*Ct*H*W and the module then divides by N
    # *again*; the double N in the denominator is intentional (pinned by tests).
    inv_denom = float(loss_weight) / float(N * Ct * H * W * N)

    vmem_limit = _vmem_limit_bytes()

    if align_w is None:
        assert Cs == Ct, "align is None only when student/teacher channels match"
        budget = max(64 << 10, vmem_limit // 12)        # ~2-4 MiB per input block
        if block_bytes_cap is not None:
            budget = int(block_bytes_cap)
        itemsize = max(preds_S.dtype.itemsize, preds_T.dtype.itemsize)

        total = Cs * HW
        pad = (-total) % 1024                           # rows become a multiple of 8
        s2 = preds_S.reshape(N, total)
        t2 = preds_T.reshape(N, total)
        if pad:
            # Zero padding is exact here: (0 - 0)^2 contributes nothing.
            s2 = jnp.pad(s2, ((0, 0), (0, pad)))
            t2 = jnp.pad(t2, ((0, 0), (0, pad)))
        rows = (total + pad) // 128
        s2 = s2.reshape(N, rows, 128)
        t2 = t2.reshape(N, rows, 128)

        row_cap = max(8, (budget // (128 * itemsize)) // 8 * 8)   # dtype-aware
        tile_r = _pick_tile(rows, 8, row_cap)
        n_tiles = rows // tile_r
        n_chunks = 2 if (N == 1 and n_tiles % 2 == 0 and n_tiles >= 2) else 1
        tpc = n_tiles // n_chunks

        grid = (N, n_chunks, tpc)
        in_specs = [
            pl.BlockSpec((None, tile_r, 128), lambda n, c, hw: (n, c * tpc + hw, 0)),
            pl.BlockSpec((None, tile_r, 128), lambda n, c, hw: (n, c * tpc + hw, 0)),
        ]
        operands = (s2, t2)
        kernel = _noalign_kernel
        acc_shape = (8, 128)
        flops = 3 * N * (total + pad)
        bytes_accessed = (int(s2.size) * s2.dtype.itemsize
                          + int(t2.size) * t2.dtype.itemsize)
        bias_correction = None
    else:
        w = align_w.reshape(Ct, Cs)                     # native dtype -> MXU
        b_f32 = (align_b if align_b is not None
                 else jnp.zeros((Ct,), jnp.float32)).astype(jnp.float32).reshape(Ct, 1)
        w_bytes = int(w.size) * w.dtype.itemsize
        # Weight/bias are resident (constant index_map) but double-buffered by
        # default; budget the spatial tiles around them.
        avail = max(2 << 20, vmem_limit - 2 * w_bytes - (1 << 20))
        budget = max(64 << 10, avail // 12)             # ~2-4 MiB per input block
        if block_bytes_cap is not None:
            budget = int(block_bytes_cap)

        pad = (-HW) % 128
        s2 = preds_S.reshape(N, Cs, HW)
        t2 = preds_T.reshape(N, Ct, HW)
        if pad:
            # Zero-padded pixels each contribute sum(b^2); subtracted below.
            s2 = jnp.pad(s2, ((0, 0), (0, 0), (0, pad)))
            t2 = jnp.pad(t2, ((0, 0), (0, 0), (0, pad)))
        HWp = HW + pad

        bytes_per_col = max(Cs * preds_S.dtype.itemsize,
                            Ct * preds_T.dtype.itemsize)              # dtype-aware
        lane_cap = max(128, (budget // bytes_per_col) // 128 * 128)
        lane_cap = min(lane_cap, 32768)    # bound vreg pressure / reduce-chain length
        tile_hw = _pick_tile(HWp, 128, lane_cap)
        n_tiles = HWp // tile_hw
        n_chunks = 2 if (N == 1 and n_tiles % 2 == 0 and n_tiles >= 2) else 1
        tpc = n_tiles // n_chunks

        grid = (N, n_chunks, tpc)
        in_specs = [
            pl.BlockSpec((None, Cs, tile_hw), lambda n, c, hw: (n, 0, c * tpc + hw)),
            pl.BlockSpec((None, Ct, tile_hw), lambda n, c, hw: (n, 0, c * tpc + hw)),
            pl.BlockSpec((Ct, Cs), lambda n, c, hw: (0, 0)),   # resident weight
            pl.BlockSpec((Ct, 1), lambda n, c, hw: (0, 0)),    # resident f32 bias
        ]
        operands = (s2, t2, w, b_f32)
        kernel = _align_kernel
        acc_shape = (Ct, 128)
        flops = N * (2 * Ct * Cs * HWp + 4 * Ct * HWp)
        bytes_accessed = (int(s2.size) * s2.dtype.itemsize
                          + int(t2.size) * t2.dtype.itemsize + w_bytes)
        bias_correction = (jnp.float32(N * pad) * jnp.sum(b_f32 ** 2)) if pad else None

    out_shape = jax.ShapeDtypeStruct((N, n_chunks, 1, 1), jnp.float32)
    out_spec = pl.BlockSpec((None, None, 1, 1), lambda n, c, hw: (n, c, 0, 0))

    partials = pl.pallas_call(
        kernel,
        out_shape=out_shape,
        grid_spec=pltpu.PrefetchScalarGridSpec(
            num_scalar_prefetch=0,
            grid=grid,
            in_specs=in_specs,
            out_specs=out_spec,
            scratch_shapes=[pltpu.VMEM(acc_shape, jnp.float32)],
        ),
        compiler_params=pltpu.CompilerParams(
            dimension_semantics=("parallel", "parallel", "arbitrary"),
            vmem_limit_bytes=vmem_limit,
        ),
        cost_estimate=pl.CostEstimate(
            flops=int(flops), transcendentals=0, bytes_accessed=int(bytes_accessed)),
    )(*operands)

    total_sq = jnp.sum(partials)
    if bias_correction is not None:
        # Remove the b^2 contribution of the spatially zero-padded pixels.
        total_sq = total_sq - bias_correction
    # TODO(synk): use_adapter=True path (two 3x3 convs + ReLU on teacher) not implemented.
    return total_sq * jnp.float32(inv_denom)


def _reference(preds_S, preds_T, align_w, align_b, loss_weight):
    N, Cs, H, W = preds_S.shape
    Ct = preds_T.shape[1]
    s = preds_S.astype(jnp.float32)
    t = preds_T.astype(jnp.float32)
    if align_w is not None:
        w = align_w.astype(jnp.float32).reshape(Ct, Cs)
        b = (align_b if align_b is not None
             else jnp.zeros((Ct,))).astype(jnp.float32).reshape(1, Ct, 1)
        s = jnp.einsum("oc,ncs->nos", w, s.reshape(N, Cs, H * W)) + b
        s = s.reshape(N, Ct, H, W)
    return jnp.mean((s - t) ** 2) / N * loss_weight


if __name__ == "__main__":
    keys = jax.random.split(jax.random.PRNGKey(0), 12)

    def check(got, want, rtol=1e-5, atol=1e-6, tag=""):
        got = jax.block_until_ready(got)
        assert jnp.allclose(got, want, rtol=rtol, atol=atol), (tag, got, want)

    # 1) align path (Cs != Ct -> 1x1 align conv), f32, default tiling.
    N, Cs, Ct, H, W = 2, 4, 8, 16, 16
    S = jax.random.normal(keys[0], (N, Cs, H, W), jnp.float32)
    T = jax.random.normal(keys[1], (N, Ct, H, W), jnp.float32)
    bound = 1.0 / (Cs ** 0.5)   # PyTorch Conv2d default init range
    Wc = jax.random.uniform(keys[2], (Ct, Cs, 1, 1), jnp.float32, -bound, bound)
    Bc = jax.random.uniform(keys[3], (Ct,), jnp.float32, -bound, bound)
    check(l2loss_pallas(S, T, Wc, Bc, 1.0), _reference(S, T, Wc, Bc, 1.0), tag="align")

    # 2) no-align path (Cs == Ct), f32, default tiling.
    S2 = jax.random.normal(keys[4], (N, Ct, H, W), jnp.float32)
    T2 = jax.random.normal(keys[5], (N, Ct, H, W), jnp.float32)
    check(l2loss_pallas(S2, T2, None, None, 1.0),
          _reference(S2, T2, None, None, 1.0), tag="noalign")

    # 3) align, N=1 with forced small blocks: exercises the spatial chunk split
    #    (uses both v7x TensorCores when N==1) and multi-tile accumulation.
    S3 = jax.random.normal(keys[6], (1, Cs, 32, 32), jnp.float32)
    T3 = jax.random.normal(keys[7], (1, Ct, 32, 32), jnp.float32)
    check(l2loss_pallas(S3, T3, Wc, Bc, 0.5, block_bytes_cap=4096),
          _reference(S3, T3, Wc, Bc, 0.5), tag="align-chunked")

    # 4) no-align with C*H*W not a multiple of 1024: exercises flat zero-padding
    #    and accumulation across several spatial tiles.
    S4 = jax.random.normal(keys[8], (2, 4, 18, 18), jnp.float32)
    T4 = jax.random.normal(keys[9], (2, 4, 18, 18), jnp.float32)
    check(l2loss_pallas(S4, T4, None, None, 1.0, block_bytes_cap=4096),
          _reference(S4, T4, None, None, 1.0), tag="noalign-padded")

    # 5) align with HW not a multiple of 128: padding + analytic bias^2 correction.
    S5 = jax.random.normal(keys[10], (2, Cs, 10, 10), jnp.float32)
    T5 = jax.random.normal(keys[11], (2, Ct, 10, 10), jnp.float32)
    check(l2loss_pallas(S5, T5, Wc, Bc, 1.0),
          _reference(S5, T5, Wc, Bc, 1.0), tag="align-padded")

    # 6) no-align, bf16 inputs (cast to f32 inside the kernel, per the module).
    S6 = S2.astype(jnp.bfloat16)
    T6 = T2.astype(jnp.bfloat16)
    check(l2loss_pallas(S6, T6, None, None, 1.0),
          _reference(S6, T6, None, None, 1.0), rtol=1e-4, tag="noalign-bf16")

    print("KERNEL_OK")
</pallas_src>

<mosaic_0001>
module attributes {stable_mosaic.version = 11 : i64} {
  func.func @_align_kernel(%arg0: i32, %arg1: i32, %arg2: i32, %arg3: memref<1x4x256xf32, #tpu.memory_space<vmem>>, %arg4: memref<1x8x256xf32, #tpu.memory_space<vmem>>, %arg5: memref<8x4xf32, #tpu.memory_space<vmem>>, %arg6: memref<8x1xf32, #tpu.memory_space<vmem>>, %arg7: memref<1x1x1x1xf32, #tpu.memory_space<vmem>>, %arg8: memref<8x128xf32, #tpu.memory_space<vmem>>) attributes {dimension_semantics = [#tpu.dimension_semantics<parallel>, #tpu.dimension_semantics<parallel>, #tpu.dimension_semantics<arbitrary>], iteration_bounds = array<i64: 2, 1, 1>, scalar_prefetch = 0 : i64, scratch_operands = 1 : i64, tpu.core_type = #tpu.core_type<tc>, window_params = [{transform_indices = @transform_0, window_bounds = array<i64: 1, 4, 256>}, {transform_indices = @transform_1, window_bounds = array<i64: 1, 8, 256>}, {pipeline_mode = #tpu.pipeline_mode<synchronous>, transform_indices = @transform_2, window_bounds = array<i64: 8, 4>}, {pipeline_mode = #tpu.pipeline_mode<synchronous>, transform_indices = @transform_3, window_bounds = array<i64: 8, 1>}, {transform_indices = @transform_4, window_bounds = array<i64: 1, 1, 1, 1>}]} {
    %c0_i32 = arith.constant 0 : i32
    %0 = arith.cmpi eq, %arg2, %c0_i32 : i32
    %1 = arith.extui %0 : i1 to i32
    %c0_i32_0 = arith.constant 0 : i32
    %2 = arith.cmpi ne, %1, %c0_i32_0 : i32
    scf.if %2 {
      %cst_16 = arith.constant 0.000000e+00 : f32
      %23 = vector.broadcast %cst_16 : f32 to vector<8x128xf32>
      %c0_17 = arith.constant 0 : index
      %c0_18 = arith.constant 0 : index
      %24 = vector.load %arg8[%c0_17, %c0_18] : memref<8x128xf32, #tpu.memory_space<vmem>>, vector<8x128xf32>
      tpu.vector_store %arg8[%c0_17, %c0_18], %23 {strides = array<i32>} : memref<8x128xf32, #tpu.memory_space<vmem>>, vector<8x128xf32>,
    } else {
    }
    %c0 = arith.constant 0 : index
    %c0_1 = arith.constant 0 : index
    %3 = vector.load %arg5[%c0, %c0_1] : memref<8x4xf32, #tpu.memory_space<vmem>>, vector<8x4xf32>
    %c0_2 = arith.constant 0 : index
    %c0_3 = arith.constant 0 : index
    %c0_4 = arith.constant 0 : index
    %4 = vector.load %arg3[%c0_2, %c0_3, %c0_4] : memref<1x4x256xf32, #tpu.memory_space<vmem>>, vector<1x4x256xf32>
    %5 = vector.shape_cast %4 : vector<1x4x256xf32> to vector<4x256xf32>
    %cst = arith.constant dense<0.000000e+00> : vector<8x256xf32>
    %6 = tpu.matmul %3, %5, %cst {dimension_numbers = #tpu.dot_dimension_numbers<[1], [0], [0], [1], [0, 0, 1, 1], [], []>} : vector<8x4xf32>, vector<4x256xf32>, vector<8x256xf32> -> vector<8x256xf32>
    %c0_5 = arith.constant 0 : index
    %c0_6 = arith.constant 0 : index
    %7 = vector.load %arg6[%c0_5, %c0_6] : memref<8x1xf32, #tpu.memory_space<vmem>>, vector<8x1xf32>
    %8 = vector.broadcast %7 : vector<8x1xf32> to vector<8x256xf32>
    %9 = arith.addf %6, %8 : vector<8x256xf32>
    %c0_7 = arith.constant 0 : index
    %c0_8 = arith.constant 0 : index
    %c0_9 = arith.constant 0 : index
    %10 = vector.load %arg4[%c0_7, %c0_8, %c0_9] : memref<1x8x256xf32, #tpu.memory_space<vmem>>, vector<1x8x256xf32>
    %11 = vector.shape_cast %10 : vector<1x8x256xf32> to vector<8x256xf32>
    %12 = arith.subf %9, %11 : vector<8x256xf32>
    %13 = arith.mulf %12, %12 : vector<8x256xf32>
    %c0_10 = arith.constant 0 : index
    %c0_11 = arith.constant 0 : index
    %14 = vector.load %arg8[%c0_10, %c0_11] : memref<8x128xf32, #tpu.memory_space<vmem>>, vector<8x128xf32>
    %15 = vector.extract_strided_slice %13 {offsets = [0, 0], sizes = [8, 128], strides = [1, 1]} : vector<8x256xf32> to vector<8x128xf32>
    %16 = vector.extract_strided_slice %13 {offsets = [0, 128], sizes = [8, 128], strides = [1, 1]} : vector<8x256xf32> to vector<8x128xf32>
    %17 = arith.addf %15, %16 : vector<8x128xf32>
    %18 = arith.addf %14, %17 : vector<8x128xf32>
    %c0_12 = arith.constant 0 : index
    %c0_13 = arith.constant 0 : index
    %19 = vector.load %arg8[%c0_12, %c0_13] : memref<8x128xf32, #tpu.memory_space<vmem>>, vector<8x128xf32>
    tpu.vector_store %arg8[%c0_12, %c0_13], %18 {strides = array<i32>} : memref<8x128xf32, #tpu.memory_space<vmem>>, vector<8x128xf32>,
    %c0_i32_14 = arith.constant 0 : i32
    %20 = arith.cmpi eq, %arg2, %c0_i32_14 : i32
    %21 = arith.extui %20 : i1 to i32
    %c0_i32_15 = arith.constant 0 : i32
    %22 = arith.cmpi ne, %21, %c0_i32_15 : i32
    scf.if %22 {
      %cst_16 = arith.constant 0.000000e+00 : f32
      %23 = vector.broadcast %cst_16 : f32 to vector<1x1xf32>
      %c0_17 = arith.constant 0 : index
      %c0_18 = arith.constant 0 : index
      %24 = vector.load %arg8[%c0_17, %c0_18] : memref<8x128xf32, #tpu.memory_space<vmem>>, vector<8x128xf32>
      %25 = vector.shape_cast %24 : vector<8x128xf32> to vector<1x8x128xf32>
      %cst_19 = arith.constant dense<0.000000e+00> : vector<1xf32>
      %26 = vector.multi_reduction <add>, %25, %cst_19 [1, 2] : vector<1x8x128xf32> to vector<1xf32>
      %27 = vector.shape_cast %26 : vector<1xf32> to vector<1x1x1xf32>
      %28 = vector.extract %27[0, 0, 0] : f32 from vector<1x1x1xf32>
      %29 = vector.broadcast %28 : f32 to vector<1x1xf32>
      %30 = arith.addf %23, %29 : vector<1x1xf32>
      %c0_20 = arith.constant 0 : index
      %c0_21 = arith.constant 0 : index
      %c0_22 = arith.constant 0 : index
      %c0_23 = arith.constant 0 : index
      %31 = vector.load %arg7[%c0_20, %c0_21, %c0_22, %c0_23] : memref<1x1x1x1xf32, #tpu.memory_space<vmem>>, vector<1x1x1x1xf32>
      %32 = vector.shape_cast %31 : vector<1x1x1x1xf32> to vector<1x1xf32>
      %33 = vector.shape_cast %30 : vector<1x1xf32> to vector<1x1x1x1xf32>
      tpu.vector_store %arg7[%c0_20, %c0_21, %c0_22, %c0_23], %33 {strides = array<i32>} : memref<1x1x1x1xf32, #tpu.memory_space<vmem>>, vector<1x1x1x1xf32>,
    } else {
    }
    return
  }
  func.func @transform_0(%arg0: i32, %arg1: i32, %arg2: i32) -> (i32, i32, i32) {
    %c1_i32 = arith.constant 1 : i32
    %0 = arith.muli %arg1, %c1_i32 : i32
    %1 = arith.addi %0, %arg2 : i32
    %c0_i32 = arith.constant 0 : i32
    %c0_i32_0 = arith.constant 0 : i32
    return %arg0, %c0_i32, %1 : i32, i32, i32
  }
  func.func @transform_1(%arg0: i32, %arg1: i32, %arg2: i32) -> (i32, i32, i32) {
    %c1_i32 = arith.constant 1 : i32
    %0 = arith.muli %arg1, %c1_i32 : i32
    %1 = arith.addi %0, %arg2 : i32
    %c0_i32 = arith.constant 0 : i32
    %c0_i32_0 = arith.constant 0 : i32
    return %arg0, %c0_i32, %1 : i32, i32, i32
  }
  func.func @transform_2(%arg0: i32, %arg1: i32, %arg2: i32) -> (i32, i32) {
    %c0_i32 = arith.constant 0 : i32
    %c0_i32_0 = arith.constant 0 : i32
    %c0_i32_1 = arith.constant 0 : i32
    return %c0_i32, %c0_i32_0 : i32, i32
  }
  func.func @transform_3(%arg0: i32, %arg1: i32, %arg2: i32) -> (i32, i32) {
    %c0_i32 = arith.constant 0 : i32
    %c0_i32_0 = arith.constant 0 : i32
    %c0_i32_1 = arith.constant 0 : i32
    return %c0_i32, %c0_i32_0 : i32, i32
  }
  func.func @transform_4(%arg0: i32, %arg1: i32, %arg2: i32) -> (i32, i32, i32, i32) {
    %c0_i32 = arith.constant 0 : i32
    %c0_i32_0 = arith.constant 0 : i32
    %c0_i32_1 = arith.constant 0 : i32
    return %arg0, %arg1, %c0_i32, %c0_i32_0 : i32, i32, i32, i32
  }
}

</mosaic_0001>

<bundles_post_ra>
// kernel: tpu_custom_call.1
= control target key start
LH: loop header
LB: loop body
LE: loop exit
PB: predicated region body
PF: predicated region fallthrough
CT: control target
= control target key end

     0   :  { %9 = vsyncpa [#allocation4], 0  ;;  %s842_s0 = inlined_call_operand.vmem [shape: f32[2,4,256], index: 0, kind: input, shape index: {}]   ;;  %s843_s1 = inlined_call_operand.hbm [shape: f32[2,8,256], index: 1, kind: input, shape index: {}]   ;;  %s844_s2 = inlined_call_operand.vmem [shape: f32[8,4], index: 2, kind: input, shape index: {}]   ;;  %s845_s3 = inlined_call_operand.vmem [shape: f32[8,1], index: 3, kind: input, shape index: {}]   ;;  %s846_s4 = inlined_call_operand.vmem [shape: f32[2,1,1,1], index: 4, kind: output, shape index: {}]  }
   0x1   :  { %11 = vsyncpa [#allocation4 + $0x1], 0  ;;  %s704_s15 = smov 0   ;;  %s706_s16 = smov 0  }
   0x2   :  { %s708_s17 = smov 0   ;;  %s710_s18 = smov 0  }
   0x3   :  { %s712_s19 = smov 0   ;;  %s714_s20 = smov 0  }
   0x4 LB: > { %s515_s21 = sadd.s32 4294967295, %s674_s20   ;;  %s36_s22 = sadd.s32 1, %s670_s19  ;;  %s674_s20 = sphi %s714_s20, %s17_s20   ;;  %s670_s19 = sphi %s712_s19, %s856_s19   ;;  %s666_s18 = sphi %s710_s18, %s855_s18   ;;  %s662_s17 = sphi %s708_s17, %s854_s17   ;;  %s658_s16 = sphi %s706_s16, %s853_s16   ;;  %s654_s15 = sphi %s704_s15, %s852_s15  }
   0x5   : > { %p38_p0 = scmp.ge.s32.totalorder %s36_s22, 2  ;;  %s77_s23 = sadd.s32 1, %s662_s17 }
   0x6   : > { %p84_p1 = scmp.ne.s32.totalorder %s662_s17, %s658_s16  ;;  %p85_p2 = scmp.eq.s32.totalorder %s674_s20, 0 }
   0x7   : > { %s858_s22 = smov (%p38_p0, %s36_s22), 0  ;;  %p90_p4 = scmp.ne.s32.totalorder %s658_s16, %s654_s15 }
   0x8   : > { %p740_p3 = por %p85_p2, %p84_p1  ;;  %s72_s25 = ssub.s32 %s670_s19, %s858_s22 }
   0x9   : > { %p91_p5 = scmp.eq.s32.totalorder %s515_s21, 0  ;;  %p75_p6 = scmp.eq.s32.totalorder %s72_s25, 0 }
   0xa   : > { %p541_p8 = scmp.lt.s32.totalorder %s674_s20, 2  ;;  %s205_s28 = sand.u32 1, %s662_s17  }
   0xb   : > { %p747_p7 = por %p91_p5, %p90_p4  ;;  %s531_s29 = sshll.u32 %s670_s19, 8 }
   0xc   : > { %s753_s27 = scalar_select %p75_p6, %s662_s17, %s77_s23  }
   0xd   : > { %s519_s30 = sshll.u32 %s205_s28, 4  ;;  %s760_s7 = scalar_lea.hbm %s843_s1, %s531_s29 }
   0xe   : > { %s209_s8 = scalar_lea.vmem [#allocation3], %s519_s30  ;;  %p764_p9 = pnand %p541_p8, %p740_p3 }
   0xf   : > { %s220_s9 = sshll.u32 %s209_s8, 4  ;;  %s206_s11 = scalar_lea.sflag [#allocation4], %s205_s28  ;;  %s768_s9 = int_to_ptr.vmem [resolvable:$true] %s220_s9 }
  0x10   : > { %s594_s12 = scalar_lea.hbm %s760_s7, 256  ;;  %p596_p13 = pneg %p764_p9 }
  0x11   : > { %p595_p12 = scmp.ne.s32.totalorder %s760_s7, %s594_s12  ;;  %s599_s15 = scalar_lea.hbm %s843_s1, 512 }
  0x12   : > { %p600_p2 = scmp.lt.u32.totalorder %s760_s7, %s843_s1  ;;  %p601_p3 = scmp.lt.u32.totalorder %s599_s15, %s594_s12 }
  0x13   : > { %p597_p0 = pnand %p596_p13, %p595_p12  ;;  %p603_p5 = scmp.lt.u32.totalorder %s594_s12, %s760_s7 }
  0x14   : > { %p602_p4 = por %p601_p3, %p600_p2 }
  0x15   : > { %p598_p1 = pneg %p597_p0 }
  0x16   : > { %p604_p6 = por %p603_p5, %p602_p4 }
  0x18   : > { %p605_p8 = pnand %p604_p6, %p598_p1 }
  0x1a   : > { %608 = shalt.err (!%p605_p8)
}
  0x1b   : > { %s609_s24 = scalar_lea.vmem %s768_s9, 256  ;;  %s676_s25 = smov [#allocation3]  }
  0x1c   : > { %p610_p12 = scmp.ne.s32.totalorder %s768_s9, %s609_s24  ;;  %s614_s28 = sshll.u32 %s676_s25, 4  ;;  %s615_s28 = int_to_ptr.vmem [resolvable:$false] %s614_s28 }
  0x1d   : > { %s616_s29 = scalar_lea.vmem %s615_s28, 512  ;;  %p617_p11 = scmp.lt.s32.totalorder %s768_s9, %s615_s28 }
  0x1e   : > { %p612_p0 = pnand %p610_p12, %p596_p13  ;;  %p618_p2 = scmp.lt.s32.totalorder %s616_s29, %s609_s24 }
  0x20   : > { %p613_p10 = pneg %p612_p0  ;;  %p619_p3 = por %p618_p2, %p617_p11 }
  0x22   : > { %p620_p4 = pnand %p619_p3, %p613_p10 }
  0x24   : > { %623 = shalt.err (!%p620_p4)
}
  0x25   : > { %540 = dma.hbm_to_vmem [thread:$0]  (!%p764_p9), %s760_s7, 256, %s768_s9, %s206_s11  }
  0x26   : > { %p850_p1 = scmp.lt.s32.totalorder %s674_s20, 3  ;;  %p851_p5 = scmp.ge.s32.totalorder %s674_s20, 1 }
  0x28   : > { %p226_p13 = pnand %p851_p5, %p850_p1 }
  0x29   : > { %s231_s30 = sand.u32 (!%p226_p13), 1, %s658_s16  }
  0x2a   : > { %229 = sbr.rel (%p226_p13) target bundleno = 487 (0x1e7), region = 36  ;;  %s523_s5 = sshll.u32 (!%p226_p13), %s231_s30, 4 }
  0x2b   : > { %s232_s6 = scalar_lea.sflag (!%p226_p13), [#allocation4], %s231_s30  ;;  %s235_s8 = scalar_lea.vmem (!%p226_p13), [#allocation3], %s523_s5 }
  0x31   : > { %649 = dma.done.wait (%p747_p7), %s232_s6, 256  }
  0x32   : > { %651 = vsyncadd (%p747_p7), %s232_s6, 4294967040  ;;  %p273_p10 = scmp.lt.s32.totalorder %s666_s18, 1  ;;  %v677_v0 = vmov 0.0   ;;  %v678_v1 = vmov 0   ;;  %vm310_vm0 = vcmask 1043456   ;;  %v298_v3 = vld [vmem:[%s845_s3] sm:$0xff] }
  0x33   : > { %379 = vmatprep.mubr.f32.mxu0 %v677_v0  ;;  %592 = vset.pattern.permute.xlu0 %v678_v1  ;;  %v296_v5 = vld [vmem:[%s844_s2] sm:$0xff]  ;;  %vm306_vm1 = vcmask 31744   ;;  %v387_v11 = vld [vmem:[%s235_s8 + $0x8] sm:$0xff]  ;;  %vm411_vm2 = vcmask 0  }
  0x34   : > { %s860_s18 = smov (!%p273_p10, %s666_s18), 1  ;;  %301 = vperm.xlu0 %592, %v298_v3   ;;  %v386_v8 = vld [vmem:[%s235_s8] sm:$0xff] }
  0x35   : > { %s532_s7 = sshll.u32 %s860_s18, 3  ;;  %s290_s23 = scalar_lea.vmem %s846_s4, %s860_s18 }
  0x36   : > { %s280_s11 = scalar_lea.vmem %s842_s0, %s532_s7 }
  0x37   : > { %v297_v2 = vld [vmem:[%s280_s11] sm:$0xff] }
  0x38   : > { %v305_v4 = vcombine.high %v297_v2, %v297_v2 }
  0x3a   : > { %526 = vmatprep.subr.msk.mxu0 %vm310_vm0, %v305_v4 }
  0x3b   : > { %527 = vmatpush1.msk.msra.mxu0 %vm310_vm0, %v297_v2 }
  0x3c   : > { %528 = vmatmul.mubr.msk.f32.vlgmr.msra.gmra.mrb[0].mxu0 %vm306_vm1, %v296_v5 }
  0xb3   : > { %v302_v6 = vpop.permute.xlu0 %301 }
 0x10f   : > { %v381_v7 = vpop.f32.mrb[0].mxu0 }
 0x110   : > { %v382_v9 = vadd.f32 %v381_v7, %v302_v6  ;;  %v383_v10 = vpop.f32.mrb[1].mxu0 }
 0x111   : > { %v384_v12 = vadd.f32 %v383_v10, %v302_v6 }
 0x112   : > { %v388_v13 = vsub.f32 %v382_v9, %v386_v8 }
 0x113   : > { %v389_v14 = vsub.f32 %v384_v12, %v387_v11 }
 0x114   : > { %v390_v15 = vmul.f32 %v388_v13, %v388_v13 }
 0x115   : > { %v391_v16 = vmul.f32 %v389_v14, %v389_v14 }
 0x117   : > { %v393_v17 = vadd.f32 %v391_v16, %v390_v15 }
 0x119   : > { %400 = vadd.xlane.f32.xlu0 %v393_v17 }
 0x1a6   : > { %v401_v18 = vpop.xlane.xlu0 %400 }
 0x1a7   : > { %v402_v19 = vrot.slane %v401_v18, 4 }
 0x1a9   : > { %v403_v20 = vadd.f32 %v402_v19, %v401_v18 }
 0x1ab   : > { %v404_v21 = vrot.slane %v403_v20, 2 }
 0x1ad   : > { %v405_v22 = vadd.f32 %v404_v21, %v403_v20 }
 0x1af   : > { %v406_v23 = vrot.slane %v405_v22, 1 }
 0x1b1   : > { %v407_v24 = vadd.f32 %v406_v23, %v405_v22 }
 0x1b3   : > { %533 = vpush %v407_v24 }
 0x1e4   : > { %s534_s24 = spop %533 }
 0x1e5   : > { %v409_v25 = vstv %s534_s24 }
 0x1e6   : > { %412 = vst.msk [vmem:[%s290_s23] sm:$0x1] %vm411_vm2, %v409_v25 }
 0x1e7 PF: > { %s17_s20 = sadd.s32 1, %s674_s20   ;;  %s852_s15 = smov %s658_s16 }
 0x1e8   : > { %p14_p7 = scmp.ge.s32.totalorder %s17_s20, 4   ;;  %s853_s16 = smov %s662_s17 }
 0x1e9   : > { %s854_s17 = smov %s753_s27  ;;  %s855_s18 = smov %s670_s19 }
 0x1ea   : > { %s856_s19 = smov %s858_s22  ;;  %16 = sbr.rel (!%p14_p7) target bundleno = 4 (0x4), region = 87 }
 0x1f1   :  { %436 = vsyncpa [#allocation4], 1 }
 0x1f2   :  { %438 = vsyncpa [#allocation4 + $0x1], 1 }

</bundles_post_ra>
